<compile_context>
chip_gen: v6e
topology: v6e:2x2x1
jax: 0.10.0
libtpu: 0.0.40
codegen_flags: <defaults>
</compile_context>

<pallas_src>
import functools
import math

import jax
import jax.numpy as jnp
from jax.experimental import pallas as pl
from jax.experimental.pallas import tpu as pltpu


# -----------------------------------------------------------------------------
# Fused tiled matmul + per-channel affine (+ReLU) Pallas kernel
# -----------------------------------------------------------------------------
def _mm_affine_kernel(x_ref, w_ref, scale_ref, shift_ref, o_ref, acc_ref, *, relu):
    k = pl.program_id(2)

    @pl.when(k == 0)
    def _():
        acc_ref[...] = jnp.zeros_like(acc_ref)

    acc_ref[...] += jnp.dot(x_ref[...], w_ref[...],
                            preferred_element_type=jnp.float32)

    @pl.when(k == pl.num_programs(2) - 1)
    def _():
        y = acc_ref[...] * scale_ref[...] + shift_ref[...]
        if relu:
            y = jnp.maximum(y, 0.0)
        o_ref[...] = y.astype(o_ref.dtype)


def _round_up(x, m):
    return (x + m - 1) // m * m


def matmul_affine(x, w, scale, shift, *, relu=False, use_bf16=True,
                  out_dtype=jnp.float32):
    """y = opt_relu((x @ w) * scale + shift); scale/shift are (1, N) per-channel."""
    M, K = x.shape
    K2, N = w.shape
    assert K == K2 and scale.shape == (1, N) and shift.shape == (1, N)
    assert N % 128 == 0, "output channels must be padded to a multiple of 128"

    # Tile sizes: whole-extent for small dims, 256/512 tiles otherwise.
    tm = 256 if M >= 256 else _round_up(M, 8)
    tn = 256 if (N >= 256 and N % 256 == 0) else 128
    tk = 512 if K > 512 else K

    Mp = _round_up(M, tm)
    Kp = _round_up(K, tk)

    in_dtype = jnp.bfloat16 if use_bf16 else jnp.float32
    if (Mp, Kp) == (M, K):
        xp = x.astype(in_dtype)
    else:
        xp = jnp.zeros((Mp, Kp), in_dtype).at[:M, :K].set(x.astype(in_dtype))
    if Kp == K:
        wp = w.astype(in_dtype)
    else:
        wp = jnp.zeros((Kp, N), in_dtype).at[:K, :].set(w.astype(in_dtype))

    scale = scale.astype(jnp.float32)
    shift = shift.astype(jnp.float32)

    grid = (Mp // tm, N // tn, Kp // tk)
    itemsize = 2 if use_bf16 else 4
    cost = pl.CostEstimate(
        flops=2 * Mp * Kp * N,
        transcendentals=0,
        bytes_accessed=(Mp * Kp + Kp * N) * itemsize + Mp * N * 4,
    )

    out = pl.pallas_call(
        functools.partial(_mm_affine_kernel, relu=relu),
        out_shape=jax.ShapeDtypeStruct((Mp, N), out_dtype),
        grid_spec=pltpu.PrefetchScalarGridSpec(
            num_scalar_prefetch=0,
            grid=grid,
            in_specs=[
                pl.BlockSpec((tm, tk), lambda i, j, k: (i, k)),
                pl.BlockSpec((tk, tn), lambda i, j, k: (k, j)),
                pl.BlockSpec((1, tn), lambda i, j, k: (0, j)),
                pl.BlockSpec((1, tn), lambda i, j, k: (0, j)),
            ],
            out_specs=pl.BlockSpec((tm, tn), lambda i, j, k: (i, j)),
            scratch_shapes=[pltpu.VMEM((tm, tn), jnp.float32)],
        ),
        compiler_params=pltpu.CompilerParams(
            dimension_semantics=("parallel", "parallel", "arbitrary")),
        cost_estimate=cost,
    )(xp, wp, scale, shift)
    return out[:M]


# -----------------------------------------------------------------------------
# Reparameterization kernel: z = eps * exp(0.5 * logvar) + mu
# -----------------------------------------------------------------------------
def _reparam_kernel(mu_ref, logvar_ref, eps_ref, z_ref):
    z_ref[...] = eps_ref[...] * jnp.exp(0.5 * logvar_ref[...]) + mu_ref[...]


def reparameterize(mu, logvar, eps):
    return pl.pallas_call(
        _reparam_kernel,
        out_shape=jax.ShapeDtypeStruct(mu.shape, mu.dtype),
    )(mu, logvar, eps)


# -----------------------------------------------------------------------------
# Conv / ConvTranspose lowered to the fused matmul kernel via im2col
# -----------------------------------------------------------------------------
def _im2col(x, k, stride, pad):
    """x: [B,C,H,W] -> patches [B*Ho*Wo, C*k*k], (ci, di, dj) ordering (OIHW)."""
    B, C, H, W = x.shape
    xp = jnp.pad(x, ((0, 0), (0, 0), (pad, pad), (pad, pad)))
    Ho = (H + 2 * pad - k) // stride + 1
    Wo = (W + 2 * pad - k) // stride + 1
    rows = []
    for di in range(k):
        cols = []
        for dj in range(k):
            cols.append(xp[:, :,
                           di:di + (Ho - 1) * stride + 1:stride,
                           dj:dj + (Wo - 1) * stride + 1:stride])
        rows.append(jnp.stack(cols, axis=2))           # [B,C,k,Ho,Wo]
    pat = jnp.stack(rows, axis=2)                      # [B,C,k,k,Ho,Wo]
    pat = pat.transpose(0, 4, 5, 1, 2, 3)              # [B,Ho,Wo,C,k,k]
    return pat.reshape(B * Ho * Wo, C * k * k), (B, Ho, Wo)


def conv2d_bn_relu(x, w, scale, shift, *, stride, pad, relu=True):
    """w: [Cout, Cin, k, k] (PyTorch Conv2d layout, bias folded into shift)."""
    Cout, Cin, kh, kw = w.shape
    cols, (B, Ho, Wo) = _im2col(x, kh, stride, pad)
    wm = w.reshape(Cout, Cin * kh * kw).T              # [K, Cout]
    y = matmul_affine(cols, wm, scale, shift, relu=relu)
    return y.reshape(B, Ho, Wo, Cout).transpose(0, 3, 1, 2)


def conv_transpose2d_bn_relu(x, w, scale, shift, *, stride, pad, relu=True):
    """w: [Cin, Cout, k, k] (PyTorch ConvTranspose2d layout), output_padding=0."""
    Cin, Cout, kh, kw = w.shape
    B, C, H, W = x.shape
    # zero-insert upsample + (k-1-pad) border  ==  equivalent stride-1 conv
    up = jnp.zeros((B, C, (H - 1) * stride + 1, (W - 1) * stride + 1), x.dtype)
    up = up.at[:, :, ::stride, ::stride].set(x)
    w_conv = jnp.flip(w, axis=(2, 3)).transpose(1, 0, 2, 3)  # [Cout, Cin, k, k]
    return conv2d_bn_relu(up, w_conv, scale, shift,
                          stride=1, pad=kh - 1 - pad, relu=relu)


def conv_transpose2d_1x1_bias(x, w, bias):
    """Final ConvTranspose2d(C, nc, 1): pointwise channel mix + bias.
    Output lanes padded to 128 for dense stores; padding sliced off after."""
    Cin, Cout, _, _ = w.shape
    B, C, H, W = x.shape
    Np = _round_up(Cout, 128)
    wm = jnp.zeros((Cin, Np), jnp.float32).at[:, :Cout].set(w[:, :, 0, 0])
    shift = jnp.zeros((1, Np), jnp.float32).at[0, :Cout].set(bias)
    scale = jnp.ones((1, Np), jnp.float32)
    xin = x.transpose(0, 2, 3, 1).reshape(B * H * W, C)
    y = matmul_affine(xin, wm, scale, shift, relu=False)
    return y[:, :Cout].reshape(B, H, W, Cout).transpose(0, 3, 1, 2)


def fc_mu_logvar(flat, w_mu, b_mu, w_lv, b_lv):
    """Both heads fused into one lane-dense (128-wide) matmul: [mu | logvar | pad]."""
    z_dim = w_mu.shape[0]
    K = flat.shape[1]
    Np = _round_up(2 * z_dim, 128)
    w = jnp.zeros((K, Np), jnp.float32)
    w = w.at[:, :z_dim].set(w_mu.T).at[:, z_dim:2 * z_dim].set(w_lv.T)
    shift = jnp.zeros((1, Np), jnp.float32)
    shift = shift.at[0, :z_dim].set(b_mu).at[0, z_dim:2 * z_dim].set(b_lv)
    scale = jnp.ones((1, Np), jnp.float32)
    y = matmul_affine(flat, w, scale, shift, relu=False)
    return y[:, :z_dim], y[:, z_dim:2 * z_dim]


def linear(x, w, b):
    """w: [out, in] (PyTorch Linear layout)."""
    N = w.shape[0]
    scale = jnp.ones((1, N), jnp.float32)
    shift = b.reshape(1, N)
    return matmul_affine(x, w.T, scale, shift, relu=False)


def _bn_fold(gamma, beta, mean, var, eps=1e-5):
    scale = gamma / jnp.sqrt(var + eps)
    shift = beta - mean * scale
    return scale.reshape(1, -1), shift.reshape(1, -1)


# -----------------------------------------------------------------------------
# VAE forward:  x_recon, z, mu, logvar = VAE(x)
# -----------------------------------------------------------------------------
def vae_forward(params, x, eps):
    p = params
    B = x.shape[0]

    # ----- encoder: 4 x (Conv2d -> BN -> ReLU), each a single fused kernel -----
    h = x
    for layer in p["enc"]:
        scale, shift = _bn_fold(layer["gamma"], layer["beta"],
                                layer["mean"], layer["var"])
        h = conv2d_bn_relu(h, layer["w"], scale, shift, stride=2, pad=1, relu=True)

    flat = h.reshape(B, -1)                            # View((-1, 1024*2*2))
    mu, logvar = fc_mu_logvar(flat, p["fc_mu_w"], p["fc_mu_b"],
                              p["fc_lv_w"], p["fc_lv_b"])
    z = reparameterize(mu, logvar, eps)

    # ----- decoder -----
    d = linear(z, p["dec_lin_w"], p["dec_lin_b"])      # Linear(z_dim, 1024*4*4)
    h = d.reshape(B, 1024, 4, 4)                       # View((-1, 1024, 4, 4))
    for layer in p["dec"]:
        scale, shift = _bn_fold(layer["gamma"], layer["beta"],
                                layer["mean"], layer["var"])
        h = conv_transpose2d_bn_relu(h, layer["w"], scale, shift,
                                     stride=2, pad=1, relu=True)
    x_recon = conv_transpose2d_1x1_bias(h, p["dec_out_w"], p["dec_out_b"])
    return x_recon, z, mu, logvar


# -----------------------------------------------------------------------------
# Parameter construction (kaiming-style init; BN at fresh-init statistics)
# -----------------------------------------------------------------------------
def init_params(key, z_dim=32, nc=3, f_filt=4):
    keys = jax.random.split(key, 16)
    ki = iter(keys)

    def kaiming(k, shape, fan_in):
        return jax.random.normal(k, shape, jnp.float32) * math.sqrt(2.0 / fan_in)

    def bn(cout):
        return dict(gamma=jnp.ones((cout,), jnp.float32),
                    beta=jnp.zeros((cout,), jnp.float32),
                    mean=jnp.zeros((cout,), jnp.float32),
                    var=jnp.ones((cout,), jnp.float32))

    enc = []
    for cin, cout, kk in [(nc, 128, 4), (128, 256, 4), (256, 512, 4),
                          (512, 1024, f_filt)]:
        enc.append(dict(w=kaiming(next(ki), (cout, cin, kk, kk), cin * kk * kk), **bn(cout)))

    dec = []
    for cin, cout, kk in [(1024, 512, f_filt), (512, 256, 4), (256, 128, 4)]:
        dec.append(dict(w=kaiming(next(ki), (cin, cout, kk, kk), cin * kk * kk), **bn(cout)))

    fc_in = 1024 * 2 * 2
    return dict(
        enc=enc,
        dec=dec,
        fc_mu_w=kaiming(next(ki), (z_dim, fc_in), fc_in),
        fc_mu_b=jnp.zeros((z_dim,), jnp.float32),
        fc_lv_w=kaiming(next(ki), (z_dim, fc_in), fc_in),
        fc_lv_b=jnp.zeros((z_dim,), jnp.float32),
        dec_lin_w=kaiming(next(ki), (1024 * 4 * 4, z_dim), z_dim),
        dec_lin_b=jnp.zeros((1024 * 4 * 4,), jnp.float32),
        dec_out_w=kaiming(next(ki), (128, nc, 1, 1), 128),
        dec_out_b=jnp.zeros((nc,), jnp.float32),
    )


if __name__ == "__main__":
    key = jax.random.PRNGKey(0)
    k_param, k_x, k_eps = jax.random.split(key, 3)

    B, NC, Z_DIM, IMG = 2, 3, 32, 32   # 32x32 input -> 2x2 before View((-1, 1024*2*2))
    params = init_params(k_param, z_dim=Z_DIM, nc=NC, f_filt=4)
    x = jax.random.normal(k_x, (B, NC, IMG, IMG), jnp.float32)
    # epsilon ~ N(0,1) (deterministic stand-in for torch.randn in reparameterize)
    eps = jax.random.normal(k_eps, (B, Z_DIM), jnp.float32)

    # Spot-check the fused conv+BN+ReLU kernel against an f32 lax.conv reference.
    c0 = params["enc"][0]
    s0, t0 = _bn_fold(c0["gamma"], c0["beta"], c0["mean"], c0["var"])
    got = conv2d_bn_relu(x, c0["w"], s0, t0, stride=2, pad=1, relu=True)
    ref = jax.lax.conv_general_dilated(x, c0["w"], (2, 2), ((1, 1), (1, 1)),
                                       dimension_numbers=("NCHW", "OIHW", "NCHW"))
    ref = jnp.maximum(ref * s0[0][None, :, None, None]
                      + t0[0][None, :, None, None], 0.0)
    rel = jnp.linalg.norm(got - ref) / (jnp.linalg.norm(ref) + 1e-12)
    assert float(rel) < 2e-2, f"fused conv kernel mismatch: rel_err={float(rel)}"

    fwd = jax.jit(vae_forward)
    x_recon, z, mu, logvar = fwd(params, x, eps)
    jax.block_until_ready((x_recon, z, mu, logvar))

    assert x_recon.shape == (B, NC, IMG, IMG)
    assert z.shape == (B, Z_DIM)
    assert mu.shape == (B, Z_DIM)
    assert logvar.shape == (B, Z_DIM)
    assert bool(jnp.all(jnp.isfinite(x_recon)))
    assert bool(jnp.all(jnp.isfinite(z)))

    print("KERNEL_OK")
</pallas_src>

<mosaic_0001>
module attributes {stable_mosaic.version = 11 : i64} {
  func.func @_mm_affine_kernel(%arg0: i32, %arg1: i32, %arg2: i32, %arg3: memref<256x48xbf16, #tpu.memory_space<vmem>>, %arg4: memref<48x128xbf16, #tpu.memory_space<vmem>>, %arg5: memref<1x128xf32, #tpu.memory_space<vmem>>, %arg6: memref<1x128xf32, #tpu.memory_space<vmem>>, %arg7: memref<256x128xf32, #tpu.memory_space<vmem>>, %arg8: memref<256x128xf32, #tpu.memory_space<vmem>>) attributes {dimension_semantics = [#tpu.dimension_semantics<parallel>, #tpu.dimension_semantics<parallel>, #tpu.dimension_semantics<arbitrary>], iteration_bounds = array<i64: 2, 1, 1>, scalar_prefetch = 0 : i64, scratch_operands = 1 : i64, tpu.core_type = #tpu.core_type<tc>, window_params = [{transform_indices = @transform_0, window_bounds = array<i64: 256, 48>}, {transform_indices = @transform_1, window_bounds = array<i64: 48, 128>}, {transform_indices = @transform_2, window_bounds = array<i64: 1, 128>}, {transform_indices = @transform_3, window_bounds = array<i64: 1, 128>}, {transform_indices = @transform_4, window_bounds = array<i64: 256, 128>}]} {
    %c0_i32 = arith.constant 0 : i32
    %0 = arith.cmpi eq, %arg2, %c0_i32 : i32
    %1 = arith.extui %0 : i1 to i32
    %c0_i32_0 = arith.constant 0 : i32
    %2 = arith.cmpi ne, %1, %c0_i32_0 : i32
    scf.if %2 {
      %cst_10 = arith.constant 0.000000e+00 : f32
      %12 = vector.broadcast %cst_10 : f32 to vector<256x128xf32>
      %c0_11 = arith.constant 0 : index
      %c0_12 = arith.constant 0 : index
      %13 = vector.load %arg8[%c0_11, %c0_12] : memref<256x128xf32, #tpu.memory_space<vmem>>, vector<256x128xf32>
      tpu.vector_store %arg8[%c0_11, %c0_12], %12 {strides = array<i32>} : memref<256x128xf32, #tpu.memory_space<vmem>>, vector<256x128xf32>,
    } else {
    }
    %c0 = arith.constant 0 : index
    %c0_1 = arith.constant 0 : index
    %3 = vector.load %arg8[%c0, %c0_1] : memref<256x128xf32, #tpu.memory_space<vmem>>, vector<256x128xf32>
    %c0_2 = arith.constant 0 : index
    %c0_3 = arith.constant 0 : index
    %4 = vector.load %arg3[%c0_2, %c0_3] : memref<256x48xbf16, #tpu.memory_space<vmem>>, vector<256x48xbf16>
    %c0_4 = arith.constant 0 : index
    %c0_5 = arith.constant 0 : index
    %5 = vector.load %arg4[%c0_4, %c0_5] : memref<48x128xbf16, #tpu.memory_space<vmem>>, vector<48x128xbf16>
    %cst = arith.constant dense<0.000000e+00> : vector<256x128xf32>
    %6 = tpu.matmul %4, %5, %cst {dimension_numbers = #tpu.dot_dimension_numbers<[1], [0], [0], [1], [0, 0, 1, 1], [], []>} : vector<256x48xbf16>, vector<48x128xbf16>, vector<256x128xf32> -> vector<256x128xf32>
    %7 = arith.addf %3, %6 : vector<256x128xf32>
    %c0_6 = arith.constant 0 : index
    %c0_7 = arith.constant 0 : index
    %8 = vector.load %arg8[%c0_6, %c0_7] : memref<256x128xf32, #tpu.memory_space<vmem>>, vector<256x128xf32>
    tpu.vector_store %arg8[%c0_6, %c0_7], %7 {strides = array<i32>} : memref<256x128xf32, #tpu.memory_space<vmem>>, vector<256x128xf32>,
    %c0_i32_8 = arith.constant 0 : i32
    %9 = arith.cmpi eq, %arg2, %c0_i32_8 : i32
    %10 = arith.extui %9 : i1 to i32
    %c0_i32_9 = arith.constant 0 : i32
    %11 = arith.cmpi ne, %10, %c0_i32_9 : i32
    scf.if %11 {
      %c0_10 = arith.constant 0 : index
      %c0_11 = arith.constant 0 : index
      %12 = vector.load %arg8[%c0_10, %c0_11] : memref<256x128xf32, #tpu.memory_space<vmem>>, vector<256x128xf32>
      %c0_12 = arith.constant 0 : index
      %c0_13 = arith.constant 0 : index
      %13 = vector.load %arg5[%c0_12, %c0_13] : memref<1x128xf32, #tpu.memory_space<vmem>>, vector<1x128xf32>
      %14 = vector.broadcast %13 : vector<1x128xf32> to vector<256x128xf32>
      %15 = arith.mulf %12, %14 : vector<256x128xf32>
      %c0_14 = arith.constant 0 : index
      %c0_15 = arith.constant 0 : index
      %16 = vector.load %arg6[%c0_14, %c0_15] : memref<1x128xf32, #tpu.memory_space<vmem>>, vector<1x128xf32>
      %17 = vector.broadcast %16 : vector<1x128xf32> to vector<256x128xf32>
      %18 = arith.addf %15, %17 : vector<256x128xf32>
      %cst_16 = arith.constant 0.000000e+00 : f32
      %19 = vector.broadcast %cst_16 : f32 to vector<256x128xf32>
      %20 = arith.maximumf %18, %19 : vector<256x128xf32>
      %c0_17 = arith.constant 0 : index
      %c0_18 = arith.constant 0 : index
      %21 = vector.load %arg7[%c0_17, %c0_18] : memref<256x128xf32, #tpu.memory_space<vmem>>, vector<256x128xf32>
      tpu.vector_store %arg7[%c0_17, %c0_18], %20 {strides = array<i32>} : memref<256x128xf32, #tpu.memory_space<vmem>>, vector<256x128xf32>,
    } else {
    }
    return
  }
  func.func @transform_0(%arg0: i32, %arg1: i32, %arg2: i32) -> (i32, i32) {
    %c0_i32 = arith.constant 0 : i32
    return %arg0, %arg2 : i32, i32
  }
  func.func @transform_1(%arg0: i32, %arg1: i32, %arg2: i32) -> (i32, i32) {
    %c0_i32 = arith.constant 0 : i32
    return %arg2, %arg1 : i32, i32
  }
  func.func @transform_2(%arg0: i32, %arg1: i32, %arg2: i32) -> (i32, i32) {
    %c0_i32 = arith.constant 0 : i32
    %c0_i32_0 = arith.constant 0 : i32
    return %c0_i32, %arg1 : i32, i32
  }
  func.func @transform_3(%arg0: i32, %arg1: i32, %arg2: i32) -> (i32, i32) {
    %c0_i32 = arith.constant 0 : i32
    %c0_i32_0 = arith.constant 0 : i32
    return %c0_i32, %arg1 : i32, i32
  }
  func.func @transform_4(%arg0: i32, %arg1: i32, %arg2: i32) -> (i32, i32) {
    %c0_i32 = arith.constant 0 : i32
    return %arg0, %arg1 : i32, i32
  }
}

</mosaic_0001>

<bundles_post_ra>
// kernel: tpu_custom_call.1
= control target key start
LH: loop header
LB: loop body
LE: loop exit
PB: predicated region body
PF: predicated region fallthrough
CT: control target
= control target key end

     0   :  { %9 = vsyncpa [#allocation4], 0  ;;  %s1651_s0 = inlined_call_operand.vmem [shape: bf16[512,48], index: 0, kind: input, shape index: {}]   ;;  %s1652_s1 = inlined_call_operand.vmem [shape: bf16[48,128], index: 1, kind: input, shape index: {}]   ;;  %s1653_s2 = inlined_call_operand.vmem [shape: f32[1,128], index: 2, kind: input, shape index: {}]   ;;  %s1654_s3 = inlined_call_operand.vmem [shape: f32[1,128], index: 3, kind: input, shape index: {}]   ;;  %s1655_s4 = inlined_call_operand.hbm [shape: f32[512,128], index: 4, kind: output, shape index: {}]  }
   0x1   :  { %11 = vsyncpa [#allocation4 + $0x1], 0  ;;  %s1382_s15 = smov 0   ;;  %s1384_s16 = smov 0  }
   0x2   :  { %s1386_s17 = smov 0   ;;  %s1388_s18 = smov 0  }
   0x3   :  { %s1390_s19 = smov 0   ;;  %s1392_s20 = smov 0  }
   0x4 LB: > { %s1083_s21 = sadd.s32 4294967295, %s1352_s20   ;;  %s1084_s22 = sadd.s32 4294967294, %s1352_s20   ;;  %s1352_s20 = sphi %s1392_s20, %s17_s20   ;;  %s1348_s19 = sphi %s1390_s19, %s1662_s19   ;;  %s1344_s18 = sphi %s1388_s18, %s1661_s18   ;;  %s1340_s17 = sphi %s1386_s17, %s1660_s17   ;;  %s1336_s16 = sphi %s1384_s16, %s1659_s16   ;;  %s1332_s15 = sphi %s1382_s15, %s1658_s15  }
   0x5   : > { %s36_s23 = sadd.s32 1, %s1348_s19  ;;  %s153_s24 = sadd.s32 1, %s1340_s17 }
   0x6   : > { %p38_p0 = scmp.ge.s32.totalorder %s36_s23, 2  ;;  %p163_p1 = scmp.ne.s32.totalorder %s1340_s17, %s1336_s16 }
   0x7   : > { %p164_p2 = scmp.eq.s32.totalorder %s1083_s21, 1  ;;  %p169_p3 = scmp.ne.s32.totalorder %s1336_s16, %s1332_s15 }
   0x8   : > { %s1664_s23 = smov (%p38_p0, %s36_s23), 0  ;;  %p170_p5 = scmp.eq.s32.totalorder %s1084_s22, 1 }
   0x9   : > { %p1422_p4 = por %p164_p2, %p163_p1  ;;  %s148_s26 = ssub.s32 %s1348_s19, %s1664_s23 }
   0xa   : > { %p1090_p6 = scmp.ge.s32.totalorder %s1352_s20, 1  ;;  %p151_p7 = scmp.eq.s32.totalorder %s148_s26, 0 }
   0xb   : > { %p1429_p8 = por %p170_p5, %p169_p3  ;;  %p224_p9 = scmp.lt.s32.totalorder %s1352_s20, 3 }
   0xc   : > { %s1435_s28 = scalar_select %p151_p7, %s1340_s17, %s153_s24  }
   0xd   : > { %p225_p10 = pnand %p1090_p6, %p224_p9 }
   0xe   : > { %s1092_s5 = sshll.u32 (!%p225_p10), %s1344_s18, 5  ;;  %s264_s14 = sand.u32 (!%p225_p10), 1, %s1336_s16  }
   0xf   : > { %228 = sbr.rel (%p225_p10) target bundleno = 276 (0x114), region = 36  ;;  %p268_p11 = scmp.lt.s32.totalorder (!%p225_p10), %s1092_s5, 63 }
  0x10   : > { %s1091_s29 = sshll.u32 (!%p225_p10), %s264_s14, 8  ;;  %s1606_s9 = scalar_lea.sflag (!%p225_p10), [#allocation4], %s264_s14 }
  0x11   : > { %s1507_s30 = scalar_lea.vmem (!%p225_p10), [#allocation3], %s1091_s29  ;;  %s1354_s11 = smov (!%p225_p10), [#allocation3]  }
  0x12   : > { %s963_s6 = sshll.u32 (!%p225_p10), %s1507_s30, 4  ;;  %s1280_s12 = sshll.u32 (!%p225_p10), %s1354_s11, 4  ;;  %s1598_s6 = int_to_ptr.vmem [resolvable:$true] %s963_s6  ;;  %s1281_s12 = int_to_ptr.vmem [resolvable:$false] %s1280_s12 }
  0x13   : > { %p1283_p1 = scmp.lt.s32.totalorder (!%p225_p10), %s1598_s6, %s1281_s12 }
  0x14   : > { %v1257_v0 = vld [vmem:[%s1652_s1 + $0x10] sm:$0xff]   ;;  %v1258_v1 = vld [vmem:[%s1652_s1 + $0x8] sm:$0xff]   ;;  %s1666_s5 = smov (!%p268_p11, %s1092_s5), 63  ;;  %v1259_v2 = vld [vmem:[%s1652_s1] sm:$0xff]   ;;  %vm497_vm0 = vcmask 392192  }
  0x15   : > { %1156 = vmatprep.subr.bf16.mxu0 %v1257_v0  ;;  %1194 = vmatprep.subr.bf16.mxu1 %v1257_v0  ;;  %s1093_s10 = sshll.u32 %s1666_s5, 2  ;;  %v1488_v19 = vld [vmem:[%s1653_s2] ss:$0 sm:$0xff]  ;;  %s1136_s5 = sshll.u32 %s1344_s18, 12 }
  0x16   : > { %1157 = vmatpush3.bf16.msra.mxu0 %v1257_v0  ;;  %1197 = vmatpush3.bf16.msra.mxu1 %v1257_v0  ;;  %s1450_s13 = scalar_lea.vmem %s1651_s0, %s1093_s10  ;;  %v1493_v21 = vld [vmem:[%s1654_s3] ss:$0 sm:$0xff]  ;;  %s1596_s18 = scalar_lea.hbm %s1655_s4, %s1136_s5 }
  0x17   : > { %1158 = vmatprep.subr.bf16.mxu0 %v1258_v1  ;;  %1195 = vmatprep.subr.bf16.mxu1 %v1258_v1  ;;  %v1260_v3 = vld [vmem:[%s1450_s13] sm:$0xff]   ;;  %v1262_v5 = vld [vmem:[%s1450_s13 + $0x8] sm:$0xff]   ;;  %v1264_v7 = vld [vmem:[%s1450_s13 + $0x10] sm:$0xff]   ;;  %s1276_s10 = scalar_lea.vmem %s1598_s6, 4096 }
  0x18   : > { %v1261_v4 = vld [vmem:[%s1450_s13 + $0x40] sm:$0xff]   ;;  %1162 = vmatprep.mubr.msk.bf16.mxu0 %vm497_vm0, %v1260_v3  ;;  %v1263_v6 = vld [vmem:[%s1450_s13 + $0x48] sm:$0xff]   ;;  %v1265_v8 = vld [vmem:[%s1450_s13 + $0x50] sm:$0xff]   ;;  %p1277_p12 = scmp.ne.s32.totalorder %s1598_s6, %s1276_s10 }
  0x19   : > { %1178 = vmatprep.mubr.msk.bf16.mxu1 %vm497_vm0, %v1261_v4  ;;  %v1266_v9 = vld [vmem:[%s1450_s13 + $0x18] sm:$0xff]   ;;  %v1268_v11 = vld [vmem:[%s1450_s13 + $0x20] sm:$0xff]   ;;  %v1270_v13 = vld [vmem:[%s1450_s13 + $0x28] sm:$0xff]  }
  0x1a   : > { %1159 = vmatpush3.bf16.msra.mxu0 %v1258_v1  ;;  %1198 = vmatpush3.bf16.msra.mxu1 %v1258_v1  ;;  %v1267_v10 = vld [vmem:[%s1450_s13 + $0x58] sm:$0xff]   ;;  %v1269_v12 = vld [vmem:[%s1450_s13 + $0x60] sm:$0xff]   ;;  %v1271_v14 = vld [vmem:[%s1450_s13 + $0x68] sm:$0xff]   ;;  %p1278_p13 = pnand %p1277_p12, %p1422_p4 }
  0x1b   : > { %1160 = vmatprep.subr.bf16.mxu0 %v1259_v2  ;;  %1196 = vmatprep.subr.bf16.mxu1 %v1259_v2  ;;  %v1272_v15 = vld [vmem:[%s1450_s13 + $0x30] sm:$0xff]   ;;  %v1274_v17 = vld [vmem:[%s1450_s13 + $0x38] sm:$0xff]  }
  0x1c   : > { %v1273_v16 = vld [vmem:[%s1450_s13 + $0x70] sm:$0xff]   ;;  %v1275_v18 = vld [vmem:[%s1450_s13 + $0x78] sm:$0xff]   ;;  %p1279_p0 = pneg %p1278_p13  ;;  %s1282_s13 = scalar_lea.vmem %s1281_s12, 8192 }
  0x1d   : > { %p1284_p2 = scmp.lt.s32.totalorder %s1282_s13, %s1276_s10 }
  0x1e   : > { %1161 = vmatpush3.bf16.msra.mxu0 %v1259_v2  ;;  %1199 = vmatpush3.bf16.msra.mxu1 %v1259_v2 }
  0x1f   : > { %p1285_p3 = por %p1284_p2, %p1283_p1 }
  0x21   : > { %1163 = vmatmul.mubr.msk.bf16.vlgmr.msra.gmra.mxu0 %vm497_vm0, %v1262_v5  ;;  %1179 = vmatmul.mubr.msk.bf16.vlgmr.msra.gmra.mxu1 %vm497_vm0, %v1263_v6  ;;  %p1286_p5 = pnand %p1285_p3, %p1279_p0 }
  0x22   : > { %1166 = vmatprep.mubr.msk.bf16.mxu0 %vm497_vm0, %v1264_v7  ;;  %1182 = vmatprep.mubr.msk.bf16.mxu1 %vm497_vm0, %v1265_v8 }
  0x29   : > { %1167 = vmatmul.mubr.msk.bf16.gmra.mxu0 %vm497_vm0, %v1266_v9  ;;  %1183 = vmatmul.mubr.msk.bf16.gmra.mxu1 %vm497_vm0, %v1267_v10 }
  0x2a   : > { %1170 = vmatprep.mubr.msk.bf16.mxu0 %vm497_vm0, %v1268_v11  ;;  %1186 = vmatprep.mubr.msk.bf16.mxu1 %vm497_vm0, %v1269_v12 }
  0x31   : > { %1171 = vmatmul.mubr.msk.bf16.gmra.mxu0 %vm497_vm0, %v1270_v13  ;;  %1187 = vmatmul.mubr.msk.bf16.gmra.mxu1 %vm497_vm0, %v1271_v14 }
  0x32   : > { %1174 = vmatprep.mubr.msk.bf16.mxu0 %vm497_vm0, %v1272_v15  ;;  %1190 = vmatprep.mubr.msk.bf16.mxu1 %vm497_vm0, %v1273_v16 }
  0x39   : > { %1175 = vmatmul.mubr.msk.bf16.gmra.mxu0 %vm497_vm0, %v1274_v17  ;;  %1191 = vmatmul.mubr.msk.bf16.gmra.mxu1 %vm497_vm0, %v1275_v18 }
  0xe1   : > { %v1164_v20 = vpop.f32.mrf.mxu0  ;;  %v1180_v22 = vpop.f32.mrf.mxu1 }
  0xe2   : > { %v815_v23 = vmul.f32 %v1164_v20, %v1488_v19  ;;  %v831_v24 = vmul.f32 %v1180_v22, %v1488_v19 }
  0xe3   : > { %v580_v25 = vpop.f32.mrf.mxu0  ;;  %v644_v26 = vpop.f32.mrf.mxu1 }
  0xe4   : > { %v854_v27 = vadd.f32 %v1493_v21, %v815_v23  ;;  %v870_v28 = vadd.f32 %v1493_v21, %v831_v24  ;;  %v813_v29 = vmul.f32 %v1488_v19, %v580_v25  ;;  %v829_v30 = vmul.f32 %v1488_v19, %v644_v26 }
  0xe5   : > { %v1165_v31 = vpop.f32.mrf.mxu0  ;;  %v1181_v32 = vpop.f32.mrf.mxu1 }
  0xe6   : > { %v886_v33 = vmax.f32 %v854_v27, 0.0  ;;  %v902_v34 = vmax.f32 %v870_v28, 0.0  ;;  %v852_v35 = vadd.f32 %v1493_v21, %v813_v29  ;;  %v868_v36 = vadd.f32 %v1493_v21, %v829_v30 }
  0xe7   : > { %v816_v37 = vmul.f32 %v1165_v31, %v1488_v19  ;;  %v832_v38 = vmul.f32 %v1181_v32, %v1488_v19  ;;  %v583_v39 = vpop.f32.mrf.mxu0  ;;  %v647_v40 = vpop.f32.mrf.mxu1 }
  0xe8   : > { %918 = vst [vmem:[%s1507_s30 + $0x10] sm:$0xff] %v886_v33  ;;  %934 = vst [vmem:[%s1507_s30 + $0x90] sm:$0xff] %v902_v34  ;;  %v884_v41 = vmax.f32 %v852_v35, 0.0  ;;  %v900_v42 = vmax.f32 %v868_v36, 0.0  ;;  %v814_v43 = vmul.f32 %v1488_v19, %v583_v39  ;;  %v830_v44 = vmul.f32 %v1488_v19, %v647_v40 }
  0xe9   : > { %v855_v45 = vadd.f32 %v1493_v21, %v816_v37  ;;  %v871_v46 = vadd.f32 %v1493_v21, %v832_v38  ;;  %v1168_v47 = vpop.f32.mrf.mxu0  ;;  %v1184_v48 = vpop.f32.mrf.mxu1 }
  0xea   : > { %916 = vst [vmem:[%s1507_s30] sm:$0xff] %v884_v41  ;;  %932 = vst [vmem:[%s1507_s30 + $0x80] sm:$0xff] %v900_v42  ;;  %v853_v49 = vadd.f32 %v1493_v21, %v814_v43  ;;  %v869_v50 = vadd.f32 %v1493_v21, %v830_v44  ;;  %v819_v51 = vmul.f32 %v1168_v47, %v1488_v19 }
  0xeb   : > { %v835_v52 = vmul.f32 %v1184_v48, %v1488_v19  ;;  %v887_v53 = vmax.f32 %v855_v45, 0.0  ;;  %v903_v54 = vmax.f32 %v871_v46, 0.0  ;;  %v596_v55 = vpop.f32.mrf.mxu0  ;;  %v660_v56 = vpop.f32.mrf.mxu1 }
  0xec   : > { %v885_v57 = vmax.f32 %v853_v49, 0.0  ;;  %v901_v58 = vmax.f32 %v869_v50, 0.0  ;;  %v858_v59 = vadd.f32 %v1493_v21, %v819_v51  ;;  %v817_v61 = vmul.f32 %v1488_v19, %v596_v55 }
  0xed   : > { %v874_v60 = vadd.f32 %v1493_v21, %v835_v52  ;;  %919 = vst [vmem:[%s1507_s30 + $0x18] sm:$0xff] %v887_v53  ;;  %935 = vst [vmem:[%s1507_s30 + $0x98] sm:$0xff] %v903_v54  ;;  %v833_v62 = vmul.f32 %v1488_v19, %v660_v56  ;;  %v1169_v63 = vpop.f32.mrf.mxu0  ;;  %v1185_v0 = vpop.f32.mrf.mxu1 }
  0xee   : > { %917 = vst [vmem:[%s1507_s30 + $0x8] sm:$0xff] %v885_v57  ;;  %933 = vst [vmem:[%s1507_s30 + $0x88] sm:$0xff] %v901_v58  ;;  %v890_v1 = vmax.f32 %v858_v59, 0.0  ;;  %v820_v3 = vmul.f32 %v1169_v63, %v1488_v19  ;;  %v836_v4 = vmul.f32 %v1185_v0, %v1488_v19  ;;  %v856_v5 = vadd.f32 %v1493_v21, %v817_v61 }
  0xef   : > { %v906_v2 = vmax.f32 %v874_v60, 0.0  ;;  %v872_v6 = vadd.f32 %v1493_v21, %v833_v62  ;;  %v599_v7 = vpop.f32.mrf.mxu0  ;;  %v663_v8 = vpop.f32.mrf.mxu1 }
  0xf0   : > { %922 = vst [vmem:[%s1507_s30 + $0x30] sm:$0xff] %v890_v1  ;;  %v859_v9 = vadd.f32 %v1493_v21, %v820_v3  ;;  %v875_v10 = vadd.f32 %v1493_v21, %v836_v4  ;;  %v818_v11 = vmul.f32 %v1488_v19, %v599_v7  ;;  %v834_v12 = vmul.f32 %v1488_v19, %v663_v8 }
  0xf1   : > { %938 = vst [vmem:[%s1507_s30 + $0xb0] sm:$0xff] %v906_v2  ;;  %v888_v13 = vmax.f32 %v856_v5, 0.0  ;;  %v904_v14 = vmax.f32 %v872_v6, 0.0  ;;  %v1172_v15 = vpop.f32.mrf.mxu0  ;;  %v1188_v16 = vpop.f32.mrf.mxu1 }
  0xf2   : > { %v891_v17 = vmax.f32 %v859_v9, 0.0  ;;  %v907_v18 = vmax.f32 %v875_v10, 0.0  ;;  %v857_v20 = vadd.f32 %v1493_v21, %v818_v11  ;;  %v873_v22 = vadd.f32 %v1493_v21, %v834_v12 }
  0xf3   : > { %920 = vst [vmem:[%s1507_s30 + $0x20] sm:$0xff] %v888_v13  ;;  %936 = vst [vmem:[%s1507_s30 + $0xa0] sm:$0xff] %v904_v14  ;;  %v823_v23 = vmul.f32 %v1172_v15, %v1488_v19  ;;  %v839_v24 = vmul.f32 %v1188_v16, %v1488_v19  ;;  %v612_v25 = vpop.f32.mrf.mxu0  ;;  %v676_v26 = vpop.f32.mrf.mxu1 }
  0xf4   : > { %923 = vst [vmem:[%s1507_s30 + $0x38] sm:$0xff] %v891_v17  ;;  %939 = vst [vmem:[%s1507_s30 + $0xb8] sm:$0xff] %v907_v18  ;;  %v889_v27 = vmax.f32 %v857_v20, 0.0  ;;  %v905_v28 = vmax.f32 %v873_v22, 0.0  ;;  %v821_v29 = vmul.f32 %v1488_v19, %v612_v25  ;;  %v837_v30 = vmul.f32 %v1488_v19, %v676_v26 }
  0xf5   : > { %v862_v31 = vadd.f32 %v1493_v21, %v823_v23  ;;  %v878_v32 = vadd.f32 %v1493_v21, %v839_v24  ;;  %v1173_v33 = vpop.f32.mrf.mxu0  ;;  %v1189_v34 = vpop.f32.mrf.mxu1 }
  0xf6   : > { %921 = vst [vmem:[%s1507_s30 + $0x28] sm:$0xff] %v889_v27  ;;  %937 = vst [vmem:[%s1507_s30 + $0xa8] sm:$0xff] %v905_v28  ;;  %v860_v35 = vadd.f32 %v1493_v21, %v821_v29  ;;  %v876_v36 = vadd.f32 %v1493_v21, %v837_v30  ;;  %v824_v37 = vmul.f32 %v1173_v33, %v1488_v19 }
  0xf7   : > { %v840_v38 = vmul.f32 %v1189_v34, %v1488_v19  ;;  %v894_v39 = vmax.f32 %v862_v31, 0.0  ;;  %v910_v40 = vmax.f32 %v878_v32, 0.0  ;;  %v615_v41 = vpop.f32.mrf.mxu0  ;;  %v679_v42 = vpop.f32.mrf.mxu1 }
  0xf8   : > { %v892_v43 = vmax.f32 %v860_v35, 0.0  ;;  %v908_v44 = vmax.f32 %v876_v36, 0.0  ;;  %v863_v45 = vadd.f32 %v1493_v21, %v824_v37  ;;  %v822_v47 = vmul.f32 %v1488_v19, %v615_v41 }
  0xf9   : > { %v879_v46 = vadd.f32 %v1493_v21, %v840_v38  ;;  %926 = vst [vmem:[%s1507_s30 + $0x50] sm:$0xff] %v894_v39  ;;  %942 = vst [vmem:[%s1507_s30 + $0xd0] sm:$0xff] %v910_v40  ;;  %v838_v48 = vmul.f32 %v1488_v19, %v679_v42  ;;  %v1176_v49 = vpop.f32.mrf.mxu0  ;;  %v1192_v50 = vpop.f32.mrf.mxu1 }
  0xfa   : > { %924 = vst [vmem:[%s1507_s30 + $0x40] sm:$0xff] %v892_v43  ;;  %940 = vst [vmem:[%s1507_s30 + $0xc0] sm:$0xff] %v908_v44  ;;  %v895_v51 = vmax.f32 %v863_v45, 0.0  ;;  %v827_v53 = vmul.f32 %v1176_v49, %v1488_v19  ;;  %v843_v54 = vmul.f32 %v1192_v50, %v1488_v19  ;;  %v861_v55 = vadd.f32 %v1493_v21, %v822_v47 }
  0xfb   : > { %v911_v52 = vmax.f32 %v879_v46, 0.0  ;;  %v877_v56 = vadd.f32 %v1493_v21, %v838_v48  ;;  %v628_v57 = vpop.f32.mrf.mxu0  ;;  %v692_v58 = vpop.f32.mrf.mxu1 }
  0xfc   : > { %927 = vst [vmem:[%s1507_s30 + $0x58] sm:$0xff] %v895_v51  ;;  %v866_v59 = vadd.f32 %v1493_v21, %v827_v53  ;;  %v882_v60 = vadd.f32 %v1493_v21, %v843_v54  ;;  %v825_v61 = vmul.f32 %v1488_v19, %v628_v57  ;;  %v841_v62 = vmul.f32 %v1488_v19, %v692_v58 }
  0xfd   : > { %943 = vst [vmem:[%s1507_s30 + $0xd8] sm:$0xff] %v911_v52  ;;  %v893_v63 = vmax.f32 %v861_v55, 0.0  ;;  %v909_v0 = vmax.f32 %v877_v56, 0.0  ;;  %v1177_v1 = vpop.f32.mrf.mxu0  ;;  %v1193_v2 = vpop.f32.mrf.mxu1 }
  0xfe   : > { %v898_v3 = vmax.f32 %v866_v59, 0.0  ;;  %v914_v4 = vmax.f32 %v882_v60, 0.0  ;;  %v864_v5 = vadd.f32 %v1493_v21, %v825_v61  ;;  %v880_v6 = vadd.f32 %v1493_v21, %v841_v62 }
  0xff   : > { %925 = vst [vmem:[%s1507_s30 + $0x48] sm:$0xff] %v893_v63  ;;  %941 = vst [vmem:[%s1507_s30 + $0xc8] sm:$0xff] %v909_v0  ;;  %v828_v7 = vmul.f32 %v1177_v1, %v1488_v19  ;;  %v844_v8 = vmul.f32 %v1193_v2, %v1488_v19  ;;  %v631_v9 = vpop.f32.mrf.mxu0  ;;  %v695_v10 = vpop.f32.mrf.mxu1 }
 0x100   : > { %930 = vst [vmem:[%s1507_s30 + $0x70] sm:$0xff] %v898_v3  ;;  %946 = vst [vmem:[%s1507_s30 + $0xf0] sm:$0xff] %v914_v4  ;;  %v896_v11 = vmax.f32 %v864_v5, 0.0  ;;  %v912_v12 = vmax.f32 %v880_v6, 0.0  ;;  %v826_v13 = vmul.f32 %v1488_v19, %v631_v9  ;;  %v842_v14 = vmul.f32 %v1488_v19, %v695_v10 }
 0x101   : > { %v867_v15 = vadd.f32 %v1493_v21, %v828_v7  ;;  %v883_v16 = vadd.f32 %v1493_v21, %v844_v8 }
 0x102   : > { %928 = vst [vmem:[%s1507_s30 + $0x60] sm:$0xff] %v896_v11  ;;  %944 = vst [vmem:[%s1507_s30 + $0xe0] sm:$0xff] %v912_v12  ;;  %v865_v17 = vadd.f32 %v1493_v21, %v826_v13  ;;  %v881_v18 = vadd.f32 %v1493_v21, %v842_v14 }
 0x103   : > { %v899_v20 = vmax.f32 %v867_v15, 0.0  ;;  %v915_v22 = vmax.f32 %v883_v16, 0.0 }
 0x104   : > { %v897_v19 = vmax.f32 %v865_v17, 0.0  ;;  %v913_v23 = vmax.f32 %v881_v18, 0.0 }
 0x105   : > { %931 = vst [vmem:[%s1507_s30 + $0x78] sm:$0xff] %v899_v20  ;;  %947 = vst [vmem:[%s1507_s30 + $0xf8] sm:$0xff] %v915_v22 }
 0x106   : > { %929 = vst [vmem:[%s1507_s30 + $0x68] sm:$0xff] %v897_v19  ;;  %945 = vst [vmem:[%s1507_s30 + $0xe8] sm:$0xff] %v913_v23 }
 0x107   : > { %1289 = shalt.err (!%p1286_p5)
}
 0x108   : > { %s1290_s14 = scalar_lea.hbm %s1596_s18, 4096  ;;  %s1294_s24 = scalar_lea.hbm %s1655_s4, 8192 }
 0x109   : > { %p1291_p6 = scmp.ne.s32.totalorder %s1596_s18, %s1290_s14  ;;  %p1295_p10 = scmp.lt.s32.totalorder %s1596_s18, %s1655_s4 }
 0x10a   : > { %p1296_p11 = scmp.lt.s32.totalorder %s1294_s24, %s1290_s14 }
 0x10b   : > { %p1292_p7 = pnand %p1291_p6, %p1422_p4 }
 0x10c   : > { %p1297_p12 = por %p1296_p11, %p1295_p10 }
 0x10d   : > { %p1293_p9 = pneg %p1292_p7 }
 0x10f   : > { %p1298_p13 = pnand %p1297_p12, %p1293_p9 }
 0x111   : > { %1301 = shalt.err (!%p1298_p13)
}
 0x112   : > { %s1355_s30 = smov 128   ;;  %s1356_s5 = smov 8  }
 0x113   : > { %1200 = dma.vmem_to_hbm [thread:$0]  (%p1422_p4), %s1598_s6, 4096, %s1596_s18, %s1606_s9, %s1355_s30, %s1355_s30, %s1356_s5  }
 0x114 PF: > { %p1206_p0 = scmp.ge.s32.totalorder %s1352_s20, 2  ;;  %s978_s7 = sand.u32 1, %s1332_s15  }
 0x115   : > { %s979_s8 = scalar_lea.sflag [#allocation4], %s978_s7 }
 0x116   : > { %p1203_p1 = pnand %p1206_p0, %p1429_p8 }
 0x118   : > { %p1204_p2 = pneg %p1203_p1 }
 0x11a   : > { %1327 = dma.done.wait (%p1204_p2), %s979_s8, 4096  }
 0x11b   : > { %1329 = vsyncadd (%p1204_p2), %s979_s8, 4294963200  ;;  %s17_s20 = sadd.s32 1, %s1352_s20   ;;  %s1658_s15 = smov %s1336_s16 }
 0x11c   : > { %p14_p3 = scmp.ge.s32.totalorder %s17_s20, 4   ;;  %s1659_s16 = smov %s1340_s17 }
 0x11d   : > { %s1660_s17 = smov %s1435_s28  ;;  %s1661_s18 = smov %s1348_s19 }
 0x11e   : > { %s1662_s19 = smov %s1664_s23  ;;  %16 = sbr.rel (!%p14_p3) target bundleno = 4 (0x4), region = 88 }
 0x123   :  { %984 = vsyncpa [#allocation4], 1 }
 0x124   :  { %986 = vsyncpa [#allocation4 + $0x1], 1 }

</bundles_post_ra>
